<compile_context>
chip_gen: v5e
topology: v5e:2x2
jax: 0.10.0
libtpu: 0.0.40
codegen_flags: <defaults>
</compile_context>

<pallas_src>
import functools
import numpy as np
import jax
import jax.numpy as jnp
from jax.experimental import pallas as pl
from jax.experimental.pallas import tpu as pltpu


def _ceil_div(a, b):
    return -(-a // b)


def _round_up(a, b):
    return _ceil_div(a, b) * b


def _sinpos_kernel(const_ref, out_ref, *, rows_per_dense_row, tile_rows):
    """out[r, l] = w_cos[l] * cos(a) + w_sin[l] * sin(a),  a = pos(r, l) * inv_freq[l].

    const_ref : VMEM (4, cd) f32 rows: [inv_freq, lane_pos_offset, w_cos, w_sin].
                w_cos / w_sin equal `factor` on the cos / sin lanes and exactly 0
                elsewhere, so the blend is an exact per-lane select with the factor
                multiply folded in (adding an exact 0 does not round).
    out_ref   : VMEM (tile_rows, cd) output tile.

    rows_per_dense_row (k): logical (T, C) rows packed per lane-dense row
    (k * C == cd).  pos = (block_row_base + r) * k + lane_pos_offset is built from
    integer-valued f32 quantities (< 2^24), hence exact; the angle is then the same
    single fp32 multiply the NumPy/PyTorch reference performs.
    """
    k = rows_per_dense_row
    n_rows, _ = out_ref.shape

    inv_freq = const_ref[0:1, :]
    w_cos = const_ref[2:3, :]
    w_sin = const_ref[3:4, :]

    # Row index (int iota + one convert; kept int->f32 for guaranteed lowering).
    row_f = jax.lax.broadcasted_iota(jnp.int32, (n_rows, const_ref.shape[1]), 0)
    row_f = row_f.astype(jnp.float32)
    base_f = (pl.program_id(0) * (tile_rows * k)).astype(jnp.float32)

    if k == 1:
        pos = row_f + base_f                       # exact integer math in f32
    else:
        lane_off = const_ref[1:2, :]
        pos = row_f * jnp.float32(k) + (base_f + lane_off)   # exact integer math in f32

    angle = pos * inv_freq                         # bit-identical to np.outer(pos, inv_freq)
    emb = w_cos * jnp.cos(angle) + w_sin * jnp.sin(angle)
    out_ref[...] = emb.astype(out_ref.dtype)


def sinusoidal_position_encoding(seq_len, inv_freq, factor, out_dtype=jnp.float32):
    """Build the (seq_len, channels) sinusoidal table with a Pallas TPU kernel."""
    inv_freq = np.asarray(inv_freq, dtype=np.float32)
    half = inv_freq.shape[0]
    channels = 2 * half
    assert seq_len >= 1
    assert seq_len < (1 << 24), "positions must stay exactly representable in fp32"

    # ---- lane-dense packing: cd = k * channels is a multiple of 128 when affordable.
    if channels % 128 == 0:
        k = 1
    else:
        k = int(np.lcm(channels, 128) // channels)
        if k * channels > 2048:
            k = 1                                   # fallback: masked stores, still correct
    cd = k * channels
    t_pad = _round_up(seq_len, k)
    n_dense_rows = t_pad // k

    # ---- per-lane constants (all integer-valued or exact {0, factor} weights).
    factor_f32 = np.float32(factor)
    inv_freq_full = np.concatenate([inv_freq, inv_freq]).astype(np.float32)          # (C,)
    w_cos_full = np.concatenate([np.zeros(half, np.float32),
                                 np.full(half, factor_f32, np.float32)])
    w_sin_full = np.concatenate([np.full(half, factor_f32, np.float32),
                                 np.zeros(half, np.float32)])
    consts_np = np.stack([
        np.tile(inv_freq_full, k),                                                    # inv_freq
        np.repeat(np.arange(k, dtype=np.float32), channels),                          # lane pos offset
        np.tile(w_cos_full, k),                                                       # cos weight (factor)
        np.tile(w_sin_full, k),                                                       # sin weight (factor)
    ]).astype(np.float32)                                                             # (4, cd)
    consts = jnp.asarray(consts_np)

    # ---- row tiling: pure VMEM-byte budget (no row cap) + >= 2 grid steps for v7x.
    itemsize = np.dtype(out_dtype).itemsize
    row_bytes = cd * itemsize
    target_tile_bytes = 8 << 20                     # per output buffer (double-buffered)
    budget_rows = max(8, (target_tile_bytes // row_bytes) // 8 * 8)
    if n_dense_rows <= 8:
        tile_rows = n_dense_rows                    # single full-extent block
    else:
        half_rows = _round_up(_ceil_div(n_dense_rows, 2), 8)
        tile_rows = min(budget_rows, half_rows)     # >= 2 steps so both v7x TCs get work
    grid = (pl.cdiv(n_dense_rows, tile_rows),)

    kernel = functools.partial(_sinpos_kernel,
                               rows_per_dense_row=k,
                               tile_rows=tile_rows)

    total = n_dense_rows * cd
    cost = pl.CostEstimate(flops=6 * total,
                           transcendentals=2 * total,
                           bytes_accessed=total * itemsize + consts_np.size * 4)

    out_dense = pl.pallas_call(
        kernel,
        out_shape=jax.ShapeDtypeStruct((n_dense_rows, cd), out_dtype),
        grid=grid,
        in_specs=[pl.BlockSpec((4, cd), lambda i: (0, 0))],     # one tiny constant block
        out_specs=pl.BlockSpec((tile_rows, cd), lambda i: (i, 0)),
        compiler_params=pltpu.CompilerParams(
            dimension_semantics=("parallel",),
            vmem_limit_bytes=32 << 20),
        cost_estimate=cost,
    )(consts)

    out = out_dense.reshape(t_pad, channels)
    if t_pad != seq_len:
        # Only hit when seq_len % k != 0; accepts one extra copy of a tiny table.
        out = out[:seq_len]
    return out


class SinusoidalPositionEncoding:
    """JAX/Pallas port of the PyTorch module. Deterministic in-script params."""

    def __init__(self, input_size, inv_freq_factor=10, factor_ratio=None,
                 out_dtype=jnp.float32):
        self.input_size = input_size
        self.inv_freq_factor = inv_freq_factor
        channels = int(np.ceil(input_size / 2) * 2)
        self.channels = channels
        # buffer: inv_freq = 1 / f^(arange(0, C, 2) / C)
        self.inv_freq = (
            1.0
            / np.float32(inv_freq_factor)
            ** (np.arange(0, channels, 2, dtype=np.float32) / np.float32(channels))
        ).astype(np.float32)
        # parameter: factor (ones(1) * factor_ratio) or plain 1.0
        # TODO(synk): `factor` is a learnable nn.Parameter in PyTorch; here it is a
        # static scalar folded into the per-lane weight constants.
        self.factor = float(1.0 if factor_ratio is None else factor_ratio)
        self.out_dtype = out_dtype
        self._cache = {}

    def encode(self, seq_len):
        # The table depends only on seq_len -> compute once per unique T.
        if seq_len not in self._cache:
            self._cache[seq_len] = sinusoidal_position_encoding(
                seq_len, self.inv_freq, self.factor, out_dtype=self.out_dtype)
        return self._cache[seq_len]

    def __call__(self, x):
        # Only the (static) sequence length of x is used, exactly like PyTorch.
        return self.encode(x.shape[1])


def _reference(seq_len, inv_freq, factor):
    pos = np.arange(seq_len, dtype=np.float32)
    sin_inp = np.outer(pos, inv_freq).astype(np.float32)        # (T, half), fp32 product
    emb = np.concatenate([np.sin(sin_inp), np.cos(sin_inp)], axis=-1).astype(np.float32)
    return (emb * np.float32(factor)).astype(np.float32)


if __name__ == "__main__":
    # Test 1: small shapes consistent with the forward (x is (batch, seq, hidden)).
    # C=32 -> packed path (k=4, cd=128), single block.
    B, T, D = 2, 8, 32
    key = jax.random.PRNGKey(0)
    x = jax.random.normal(key, (B, T, D), dtype=jnp.float32)
    module = SinusoidalPositionEncoding(input_size=D, inv_freq_factor=10,
                                        factor_ratio=None)
    out = jax.block_until_ready(module(x))
    ref = _reference(T, module.inv_freq, module.factor)
    np.testing.assert_allclose(np.asarray(out), ref, rtol=1e-5, atol=1e-5)
    assert out.shape == (T, module.channels)
    assert out.dtype == jnp.float32

    # Test 2: wide channels (C=256, k=1), learnable factor, multi-step grid.
    # Angles reach ~2.5e3; atol leaves headroom for the backend's fp32 sin/cos
    # range-reduction error at large arguments (the argument itself is exact).
    module2 = SinusoidalPositionEncoding(input_size=256, inv_freq_factor=10,
                                         factor_ratio=2.0)
    out2 = jax.block_until_ready(module2.encode(2500))
    ref2 = _reference(2500, module2.inv_freq, module2.factor)
    np.testing.assert_allclose(np.asarray(out2), ref2, rtol=1e-5, atol=1e-4)

    # Test 3: channels not a divisor of 128 (C=96 -> k=4, cd=384), partial last
    # block and seq padding/slice path.
    module3 = SinusoidalPositionEncoding(input_size=96, inv_freq_factor=10,
                                         factor_ratio=None)
    out3 = jax.block_until_ready(module3.encode(50))
    ref3 = _reference(50, module3.inv_freq, module3.factor)
    np.testing.assert_allclose(np.asarray(out3), ref3, rtol=1e-5, atol=1e-5)
    assert out3.shape == (50, 96)

    # Test 4 (smoke): bf16 output for bf16 consumers (math stays f32 in-kernel).
    module4 = SinusoidalPositionEncoding(input_size=128, inv_freq_factor=10,
                                         factor_ratio=None, out_dtype=jnp.bfloat16)
    out4 = jax.block_until_ready(module4.encode(32))
    assert out4.dtype == jnp.bfloat16
    np.testing.assert_allclose(np.asarray(out4).astype(np.float32),
                               _reference(32, module4.inv_freq, module4.factor),
                               rtol=2e-2, atol=2e-2)

    print("KERNEL_OK")
</pallas_src>

<mosaic_0001>
module attributes {stable_mosaic.version = 11 : i64} {
  func.func @_sinpos_kernel(%arg0: i32, %arg1: memref<4x128xf32, #tpu.memory_space<vmem>>, %arg2: memref<2x128xf32, #tpu.memory_space<vmem>>) attributes {dimension_semantics = [#tpu.dimension_semantics<parallel>], iteration_bounds = array<i64: 1>, scalar_prefetch = 0 : i64, scratch_operands = 0 : i64, tpu.core_type = #tpu.core_type<tc>, window_params = [{pipeline_mode = #tpu.pipeline_mode<synchronous>, transform_indices = @transform_0, window_bounds = array<i64: 4, 128>}, {transform_indices = @transform_1, window_bounds = array<i64: 2, 128>}]} {
    %c0 = arith.constant 0 : index
    %c0_0 = arith.constant 0 : index
    %0 = vector.load %arg1[%c0, %c0_0] : memref<4x128xf32, #tpu.memory_space<vmem>>, vector<1x128xf32>
    %c2 = arith.constant 2 : index
    %c0_1 = arith.constant 0 : index
    %1 = vector.load %arg1[%c2, %c0_1] : memref<4x128xf32, #tpu.memory_space<vmem>>, vector<1x128xf32>
    %c3 = arith.constant 3 : index
    %c0_2 = arith.constant 0 : index
    %2 = vector.load %arg1[%c3, %c0_2] : memref<4x128xf32, #tpu.memory_space<vmem>>, vector<1x128xf32>
    %3 = tpu.iota {dimensions = array<i32: 0>} : vector<2x128xi32>
    %4 = arith.sitofp %3 : vector<2x128xi32> to vector<2x128xf32>
    %c8_i32 = arith.constant 8 : i32
    %5 = arith.muli %arg0, %c8_i32 : i32
    %6 = arith.sitofp %5 : i32 to f32
    %c1 = arith.constant 1 : index
    %c0_3 = arith.constant 0 : index
    %7 = vector.load %arg1[%c1, %c0_3] : memref<4x128xf32, #tpu.memory_space<vmem>>, vector<1x128xf32>
    %cst = arith.constant 4.000000e+00 : f32
    %8 = vector.broadcast %cst : f32 to vector<2x128xf32>
    %9 = arith.mulf %4, %8 : vector<2x128xf32>
    %10 = vector.broadcast %6 : f32 to vector<1x128xf32>
    %11 = arith.addf %10, %7 : vector<1x128xf32>
    %12 = vector.broadcast %11 : vector<1x128xf32> to vector<2x128xf32>
    %13 = arith.addf %9, %12 : vector<2x128xf32>
    %14 = vector.broadcast %0 : vector<1x128xf32> to vector<2x128xf32>
    %15 = arith.mulf %13, %14 : vector<2x128xf32>
    %16 = math.cos %15 : vector<2x128xf32>
    %17 = vector.broadcast %1 : vector<1x128xf32> to vector<2x128xf32>
    %18 = arith.mulf %17, %16 : vector<2x128xf32>
    %19 = math.sin %15 : vector<2x128xf32>
    %20 = vector.broadcast %2 : vector<1x128xf32> to vector<2x128xf32>
    %21 = arith.mulf %20, %19 : vector<2x128xf32>
    %22 = arith.addf %18, %21 : vector<2x128xf32>
    %c0_4 = arith.constant 0 : index
    %c0_5 = arith.constant 0 : index
    %23 = vector.load %arg2[%c0_4, %c0_5] : memref<2x128xf32, #tpu.memory_space<vmem>>, vector<2x128xf32>
    tpu.vector_store %arg2[%c0_4, %c0_5], %22 {strides = array<i32>} : memref<2x128xf32, #tpu.memory_space<vmem>>, vector<2x128xf32>,
    return
  }
  func.func @transform_0(%arg0: i32) -> (i32, i32) {
    %c0_i32 = arith.constant 0 : i32
    %c0_i32_0 = arith.constant 0 : i32
    %c0_i32_1 = arith.constant 0 : i32
    return %c0_i32, %c0_i32_0 : i32, i32
  }
  func.func @transform_1(%arg0: i32) -> (i32, i32) {
    %c0_i32 = arith.constant 0 : i32
    %c0_i32_0 = arith.constant 0 : i32
    return %arg0, %c0_i32 : i32, i32
  }
}

</mosaic_0001>

<bundles_post_ra>
// kernel: tpu_custom_call.1
= control target key start
LH: loop header
LB: loop body
LE: loop exit
PB: predicated region body
PF: predicated region fallthrough
CT: control target
= control target key end

     0   :  { %6 = vsyncpa [#allocation3], 0  ;;  %s513_s0 = inlined_call_operand.hbm [shape: f32[4,128], index: 0, kind: input, shape index: {}]   ;;  %s514_s1 = inlined_call_operand.hbm [shape: f32[2,128], index: 1, kind: output, shape index: {}]  }
   0x1   :  { %7 = vsyncpa [#allocation4], 0  ;;  %s13_s8 = sshll.u32 %s513_s0, 4  ;;  %s442_s9 = smov [#allocation2]   ;;  %s14_s8 = int_to_ptr.hbm [resolvable:$true] %s13_s8 }
   0x2   :  { %s15_s10 = sshll.u32 %s442_s9, 4  ;;  %s16_s10 = int_to_ptr.vmem [resolvable:$true] %s15_s10 }
   0x3   :  { %18 = dma.hbm_to_vmem [thread:$0]  %s14_s8, 64, %s16_s10, [#allocation3]  }
   0x4   :  { %438 = dma.done.wait [#allocation3], 64  }
   0x5   :  { %439 = vsyncadd [#allocation3], 4294967232  ;;  %v26_v0 = vlaneseq  ;;  %v386_v4 = vld [vmem:[#allocation2 + $0x1] ss:$0 sm:$0xff]  ;;  %v387_v5 = vld [vmem:[#allocation2] ss:$0 sm:$0xff] }
   0x6   :  { %v443_v19 = vmov 683565275   ;;  %v444_v21 = vmov 2475754826   ;;  %v445_v23 = vmov 2131351028  }
   0x7   :  { %v27_v1 = vshrl.u32 %v26_v0, 7  ;;  %v446_v25 = vmov 2102212464   ;;  %v447_v27 = vmov 920167782   ;;  %s450_s0 = smov [#allocation5]  }
   0x8   :  { %v448_v33 = vmov 1326507024   ;;  %s359_s11 = sshll.u32 %s450_s0, 4  ;;  %s361_s14 = sshll.u32 %s514_s1, 4  ;;  %s360_s11 = int_to_ptr.vmem [resolvable:$true] %s359_s11  ;;  %s362_s14 = int_to_ptr.hbm [resolvable:$true] %s361_s14 }
   0x9   :  { %v28_v2 = vcvt.s32.f32 %v27_v1 }
   0xb   :  { %v32_v3 = vmul.f32 4.0, %v28_v2 }
   0xd   :  { %v36_v6 = vadd.f32 %v386_v4, %v32_v3 }
   0xf   :  { %v464_v7 = vmul.f32 %v387_v5, %v36_v6 }
  0x11   :  { %v42_v8 = vand.u32 2139095040, %v464_v7  ;;  %v39_v10 = vand.u32 2147483647, %v464_v7  ;;  %vm41_vm12 = vcmp.lt.s32.totalorder %v464_v7, 0 }
  0x13   :  { %v43_v9 = vshrl.u32 %v42_v8, 23  ;;  %v46_v13 = vand.u32 8388607, %v39_v10  ;;  %v449_v8 = vmov 0   ;;  %vm40_vm13 = vcmp.le.f32.partialorder %v39_v10, 0.7853982 }
  0x15   :  { %v371_v11 = vadd.s32 4294967169, %v43_v9  ;;  %v47_v16 = vor.u32 8388608, %v46_v13 }
  0x17   :  { %v49_v12 = vadd.s32 1, %v371_v11  ;;  %v473_v35 = vshll.u32 %v47_v16, 8 }
  0x19   :  { %vm50_vm0 = vcmp.gt.s32.totalorder %v49_v12, 0  ;;  %v88_v47 = vand.u32 65535, %v473_v35  ;;  %v89_v48 = vshrl.u32 %v473_v35, 16 }
  0x1a   :  { %v51_v14 = vsel %vm50_vm0, %v49_v12, 0 }
  0x1b   :  { %v53_v15 = vand.u32 31, %v51_v14  ;;  %v470_v17 = vshrl.u32 %v51_v14, 5 }
  0x1d   :  { %v54_v18 = vsub.s32 32, %v53_v15  ;;  %v56_v20 = vshll.u32 %v443_v19, %v53_v15  ;;  %v59_v22 = vshll.u32 %v444_v21, %v53_v15  ;;  %v62_v24 = vshll.u32 %v445_v23, %v53_v15 }
  0x1e   :  { %v65_v26 = vshll.u32 %v446_v25, %v53_v15  ;;  %v68_v28 = vshll.u32 %v447_v27, %v53_v15  ;;  %vm71_vm1 = vcmp.lt.s32.totalorder %v470_v17, 1  ;;  %vm74_vm2 = vcmp.lt.s32.totalorder %v470_v17, 4 }
  0x1f   :  { %v57_v29 = vshrl.u32 %v444_v21, %v54_v18  ;;  %v60_v30 = vshrl.u32 %v445_v23, %v54_v18  ;;  %v63_v31 = vshrl.u32 %v446_v25, %v54_v18  ;;  %v66_v32 = vshrl.u32 %v447_v27, %v54_v18 }
  0x20   :  { %v69_v34 = vshrl.u32 %v448_v33, %v54_v18  ;;  %vm73_vm3 = vcmp.lt.s32.totalorder %v470_v17, 3  ;;  %vm72_vm4 = vcmp.lt.s32.totalorder %v470_v17, 2  ;;  %v55_v55 = vshrl.u32 %v443_v19, %v54_v18 }
  0x21   :  { %v58_v36 = vor.u32 %v57_v29, %v56_v20  ;;  %v61_v37 = vor.u32 %v60_v30, %v59_v22  ;;  %v64_v38 = vor.u32 %v63_v31, %v62_v24  ;;  %v67_v39 = vor.u32 %v66_v32, %v65_v26 }
  0x22   :  { %v70_v40 = vor.u32 %v69_v34, %v68_v28 }
  0x23   :  { %v79_v41 = vsel %vm71_vm1, %v58_v36, %v61_v37  ;;  %v83_v42 = vsel %vm71_vm1, %v61_v37, %v64_v38  ;;  %v80_v43 = vsel %vm74_vm2, %v67_v39, 920167782  ;;  %v75_v4 = vsel %vm71_vm1, %v55_v55, %v58_v36 }
  0x24   :  { %v84_v44 = vsel %vm74_vm2, %v70_v40, 1326507024  ;;  %v81_v45 = vsel %vm73_vm3, %v64_v38, %v80_v43  ;;  %v76_v6 = vsel %vm74_vm2, %v64_v38, 2102212464 }
  0x25   :  { %v85_v46 = vsel %vm73_vm3, %v67_v39, %v84_v44  ;;  %v82_v49 = vsel %vm72_vm4, %v79_v41, %v81_v45  ;;  %v77_v19 = vsel %vm73_vm3, %v61_v37, %v76_v6 }
  0x26   :  { %v86_v50 = vsel %vm72_vm4, %v83_v42, %v85_v46  ;;  %v112_v53 = vand.u32 65535, %v82_v49  ;;  %v113_v54 = vshrl.u32 %v82_v49, 16  ;;  %v78_v27 = vsel %vm72_vm4, %v75_v4, %v77_v19 }
  0x27   :  { %v90_v51 = vand.u32 65535, %v86_v50  ;;  %v91_v52 = vshrl.u32 %v86_v50, 16  ;;  %v132_v31 = vmul.u32 %v473_v35, %v78_v27  ;;  %vm182_vm4 = vweird.f32 %v464_v7 }
  0x28   :  { %v114_v59 = vmul.u32 %v112_v53, %v88_v47  ;;  %v115_v60 = vmul.u32 %v113_v54, %v88_v47  ;;  %v116_v61 = vmul.u32 %v112_v53, %v89_v48  ;;  %v117_v1 = vmul.u32 %v113_v54, %v89_v48 }
  0x29   :  { %v92_v56 = vmul.u32 %v90_v51, %v88_v47  ;;  %v93_v57 = vmul.u32 %v91_v52, %v88_v47  ;;  %v94_v58 = vmul.u32 %v90_v51, %v89_v48  ;;  %v95_v62 = vmul.u32 %v91_v52, %v89_v48 }
  0x2a   :  { %v118_v2 = vshll.u32 %v115_v60, 16  ;;  %v120_v3 = vshll.u32 %v116_v61, 16  ;;  %v119_v16 = vshrl.u32 %v115_v60, 16  ;;  %v121_v23 = vshrl.u32 %v116_v61, 16 }
  0x2b   :  { %v96_v63 = vshll.u32 %v93_v57, 16  ;;  %v98_v0 = vshll.u32 %v94_v58, 16  ;;  %v97_v12 = vshrl.u32 %v93_v57, 16  ;;  %v99_v20 = vshrl.u32 %v94_v58, 16 }
  0x2c   :  { %vm122_vm6 = vc.u32 %v114_v59, %v118_v2  ;;  %v124_v11 = vadd.s32 %v118_v2, %v114_v59 }
  0x2d   :  { %vm100_vm5 = vc.u32 %v92_v56, %v96_v63  ;;  %v102_v5 = vadd.s32 %v96_v63, %v92_v56  ;;  %v123_v14 = vsel %vm122_vm6, 1, %v449_v8 }
  0x2e   :  { %v101_v9 = vsel %vm100_vm5, 1, %v449_v8  ;;  %v125_v18 = vadd.s32 %v123_v14, %v117_v1  ;;  %vm126_vm8 = vc.u32 %v124_v11, %v120_v3  ;;  %v128_v26 = vadd.s32 %v124_v11, %v120_v3 }
  0x2f   :  { %v103_v13 = vadd.s32 %v101_v9, %v95_v62  ;;  %vm104_vm7 = vc.u32 %v102_v5, %v98_v0  ;;  %v127_v22 = vsel %vm126_vm8, 1, %v449_v8 }
  0x30   :  { %v105_v15 = vsel %vm104_vm7, 1, %v449_v8  ;;  %v129_v24 = vadd.s32 %v127_v22, %v125_v18 }
  0x31   :  { %v107_v21 = vadd.s32 %v105_v15, %v103_v13 }
  0x32   :  { %v130_v28 = vadd.s32 %v129_v24, %v119_v16 }
  0x33   :  { %v108_v25 = vadd.s32 %v107_v21, %v97_v12  ;;  %v389_v21 = vld [vmem:[#allocation2 + $0x3] ss:$0 sm:$0xff] }
  0x34   :  { %v131_v30 = vadd.s32 %v130_v28, %v121_v23 }
  0x35   :  { %v109_v29 = vadd.s32 %v108_v25, %v99_v20  ;;  %v388_v20 = vld [vmem:[#allocation2 + $0x2] ss:$0 sm:$0xff] }
  0x36   :  { %v135_v32 = vadd.s32 1, %v131_v30 }
  0x37   :  { %vm134_vm9 = vc.u32 %v109_v29, %v128_v26  ;;  %v133_v17 = vadd.s32 %v128_v26, %v109_v29 }
  0x38   :  { %v136_v33 = vsel %vm134_vm9, %v135_v32, %v131_v30 }
  0x39   :  { %v137_v34 = vadd.s32 %v136_v33, %v132_v31 }
  0x3b   :  { %v138_v36 = vadd.s32 536870912, %v137_v34 }
  0x3d   :  { %v139_v37 = vshrl.u32 %v138_v36, 30 }
  0x3f   :  { %v140_v38 = vshll.u32 %v139_v37, 30  ;;  %v163_v55 = vsub.s32 4, %v139_v37 }
  0x41   :  { %v141_v39 = vsub.s32 %v137_v34, %v140_v38  ;;  %v164_v58 = vsel %vm41_vm12, %v163_v55, %v139_v37 }
  0x42   :  { %v166_v61 = vsel %vm40_vm13, 0, %v164_v58 }
  0x43   :  { %vm142_vm10 = vcmp.lt.s32.totalorder %v141_v39, 0  ;;  %v143_v40 = vsub.s32 0, %v141_v39  ;;  %v339_v2 = vadd.s32 3, %v166_v61  ;;  %v183_v8 = vand.u32 3, %v166_v61 }
  0x45   :  { %v144_v41 = vsel %vm142_vm10, %v143_v40, %v141_v39  ;;  %v340_v9 = vand.u32 3, %v339_v2  ;;  %vm188_vm14 = vcmp.eq.s32.totalorder %v183_v8, 2  ;;  %vm184_vm0 = vcmp.lt.s32.totalorder %v183_v8, 2 }
  0x46   :  { %v145_v42 = vclz %v144_v41  ;;  %vm185_vm1 = vcmp.eq.s32.totalorder %v183_v8, 0 }
  0x47   :  { %vm345_vm15 = vcmp.eq.s32.totalorder %v340_v9, 2  ;;  %vm342_vm2 = vcmp.eq.s32.totalorder %v340_v9, 0  ;;  %vm341_vm3 = vcmp.lt.s32.totalorder %v340_v9, 2 }
  0x48   :  { %v372_v43 = vadd.s32 4294967294, %v145_v42 }
  0x4a   :  { %vm373_vm11 = vcmp.lt.s32.totalorder %v372_v43, 0 }
  0x4b   :  { %v148_v44 = vsel %vm373_vm11, 0, %v372_v43 }
  0x4c   :  { %v149_v45 = vsub.s32 32, %v148_v44  ;;  %v150_v46 = vshll.u32 %v141_v39, %v148_v44  ;;  %v153_v47 = vsub.s32 4294967266, %v148_v44 }
  0x4e   :  { %v151_v35 = vshrl.u32 %v133_v17, %v149_v45  ;;  %v154_v48 = vadd.s32 127, %v153_v47 }
  0x50   :  { %v152_v49 = vor.u32 %v151_v35, %v150_v46  ;;  %v155_v50 = vshll.u32 %v154_v48, 23 }
  0x52   :  { %v156_v51 = vor.u32 4788187, %v155_v50  ;;  %v159_v52 = vcvt.s32.f32 %v152_v49 }
  0x54   :  { %v157_v53 = vand.u32 2147483647, %v156_v51 }
  0x56   :  { %v160_v54 = vmul.f32 %v159_v52, %v157_v53 }
  0x58   :  { %v161_v56 = vxor.u32 2147483648, %v160_v54 }
  0x5a   :  { %v162_v57 = vsel %vm41_vm12, %v161_v56, %v160_v54 }
  0x5b   :  { %v165_v59 = vsel %vm40_vm13, %v464_v7, %v162_v57 }
  0x5c   :  { %v167_v60 = vmul.f32 %v165_v59, %v165_v59 }
  0x5e   :  { %v168_v62 = vmul.f32 -0.001358992, %v167_v60  ;;  %v175_v63 = vmul.f32 -0.00019511016, %v167_v60 }
  0x60   :  { %v169_v0 = vadd.f32 0.041655596, %v168_v62  ;;  %v176_v1 = vadd.f32 0.008332121, %v175_v63 }
  0x62   :  { %v170_v3 = vmul.f32 %v169_v0, %v167_v60  ;;  %v177_v4 = vmul.f32 %v176_v1, %v167_v60 }
  0x64   :  { %v171_v5 = vadd.f32 -0.4999988, %v170_v3  ;;  %v178_v6 = vadd.f32 -0.16666654, %v177_v4 }
  0x66   :  { %v172_v11 = vmul.f32 %v171_v5, %v167_v60  ;;  %v179_v10 = vmul.f32 %v178_v6, %v167_v60 }
  0x68   :  { %v173_v12 = vadd.f32 1.0, %v172_v11  ;;  %v180_v13 = vadd.f32 1.0, %v179_v10 }
  0x6a   :  { %v181_v14 = vmul.f32 %v180_v13, %v165_v59  ;;  %v189_v15 = vxor.u32 2147483648, %v173_v12 }
  0x6c   :  { %v186_v16 = vxor.u32 2147483648, %v181_v14  ;;  %v190_v18 = vsel %vm188_vm14, %v189_v15, %v181_v14  ;;  %v347_v19 = vsel %vm345_vm15, %v189_v15, %v181_v14 }
  0x6e   :  { %v187_v22 = vsel %vm185_vm1, %v173_v12, %v186_v16  ;;  %v344_v23 = vsel %vm342_vm2, %v173_v12, %v186_v16 }
  0x6f   :  { %v191_v24 = vsel %vm184_vm0, %v187_v22, %v190_v18  ;;  %v348_v25 = vsel %vm341_vm3, %v344_v23, %v347_v19 }
  0x70   :  { %v192_v26 = vsel %vm182_vm4, nan, %v191_v24  ;;  %v349_v27 = vsel %vm182_vm4, nan, %v348_v25 }
  0x71   :  { %v194_v28 = vmul.f32 %v388_v20, %v192_v26  ;;  %v351_v29 = vmul.f32 %v389_v21, %v349_v27 }
  0x73   :  { %v352_v30 = vadd.f32 %v351_v29, %v194_v28 }
  0x75   :  { %353 = vst [vmem:[#allocation5] sm:$0x3] %v352_v30 }
  0x76   :  { %364 = dma.vmem_to_hbm [thread:$0]  %s360_s11, 32, %s362_s14, [#allocation4]  }
  0x77   :  { %440 = dma.done.wait [#allocation4], 32  }
  0x78   :  { %441 = vsyncadd [#allocation4], 4294967264 }
  0x79   :  { %369 = vsyncpa [#allocation3], 1 }
  0x7a   :  { %370 = vsyncpa [#allocation4], 1 }

</bundles_post_ra>
